<compile_context>
chip_gen: v7x
topology: tpu7x:2x2x1
jax: 0.10.0
libtpu: 0.0.40
codegen_flags: <defaults>
</compile_context>

<pallas_src>
import functools

import jax
import jax.numpy as jnp
from jax.experimental import pallas as pl
from jax.experimental.pallas import tpu as pltpu


# ------------------------------- JAX glue -----------------------------------


def im2col_3x3(x_nhwc):
    """3x3, stride 1, pad 1 patches.  Returns (N, H*W, 9*C), tap-major, channel-minor."""
    n, h, w, c = x_nhwc.shape
    xp = jnp.pad(x_nhwc, ((0, 0), (1, 1), (1, 1), (0, 0)))
    taps = []
    for dh in range(3):
        for dw in range(3):
            taps.append(xp[:, dh:dh + h, dw:dw + w, :])
    p = jnp.stack(taps, axis=-2)                       # (N, H, W, 9, C)
    return p.reshape(n, h * w, 9 * c)


def _vmem_capacity_bytes():
    try:
        return int(pltpu.get_tpu_info().vmem_capacity_bytes)
    except Exception:
        return 64 * 1024 * 1024                        # conservative (v7x per-TC VMEM)


@functools.partial(jax.jit, static_argnames=("tm_pixels", "n_splits"))
def covid_general_forward(x_nchw, params, *, tm_pixels=8192, n_splits=2):
    """Forward pass.  x_nchw: (N, 3, H, W) float32 -> (N, 4) float32 logits."""
    n, cin, h, w = x_nchw.shape
    s = h * w
    conv_w = params["conv_w"]                          # (Cout, Cin, 3, 3) — PyTorch layout
    cout = conv_w.shape[0]

    k = 9 * cin                                        # 27
    kg = 32                                            # per-pixel K group (bias lane at idx k)
    px_per_row = 128 // kg                             # 4 pixels packed per 128-lane row
    assert k + 1 <= kg and cout <= kg

    rows = pl.cdiv(s, px_per_row)                      # packed rows needed

    # ---- tile sizing: as large as a conservative VMEM budget allows -------------------
    # live bytes / packed row ~ 2*256 B (double-buffered bf16 patches) + 512 B (f32 GEMM out)
    vmem_cap = _vmem_capacity_bytes()
    row_budget = max(16, min(vmem_cap // 8, 12 * 1024 * 1024) // 1024)
    tm_req = max(16, tm_pixels // px_per_row)
    tm_eff = min(tm_req, row_budget, pl.cdiv(rows, n_splits))
    tm_eff = max(16, (tm_eff // 16) * 16)              # bf16 sublane-pack multiple
    tiles_per_split = pl.cdiv(rows, n_splits * tm_eff)
    rows_pad = n_splits * tiles_per_split * tm_eff
    s_pad = rows_pad * px_per_row

    # ---- fold BN into the conv GEMM: scale into weights, shift via a bias lane --------
    eps = 1e-5
    scale = params["bn_gamma"] / jnp.sqrt(params["bn_var"] + eps)
    shift = params["bn_beta"] - params["bn_mean"] * scale
    w_mat = jnp.transpose(conv_w, (2, 3, 1, 0)).reshape(k, cout) * scale[None, :]
    w_grp = jnp.zeros((kg, kg), jnp.float32)
    w_grp = w_grp.at[:k, :cout].set(w_mat)
    w_grp = w_grp.at[k, :cout].set(shift)              # BN shift rides the MXU for free
    w_blk = jnp.kron(jnp.eye(px_per_row, dtype=jnp.float32), w_grp).astype(jnp.bfloat16)

    # ---- activations: im2col + bias-ones column (BEFORE the spatial zero-pad, so padded
    #      tail pixels contribute exactly 0 after ReLU), then pack 4 pixels per 128 lanes.
    x_nhwc = jnp.transpose(x_nchw, (0, 2, 3, 1))
    patches = im2col_3x3(x_nhwc)                                        # (N, S, 27) f32
    patches = jnp.concatenate([patches, jnp.ones((n, s, 1), jnp.float32)], axis=-1)
    patches = jnp.pad(patches, ((0, 0), (0, s_pad - s), (0, kg - (k + 1))))
    patches = patches.reshape(n, rows_pad, px_per_row * kg).astype(jnp.bfloat16)

    def kernel(p_ref, w_ref, o_ref, acc_ref):
        si = pl.program_id(2)

        @pl.when(si == 0)
        def _init():
            acc_ref[...] = jnp.zeros_like(acc_ref)

        # conv-as-GEMM on the MXU (bf16 in, f32 acc); BN shift arrives via the bias lane.
        y = jnp.dot(p_ref[0], w_ref[...], preferred_element_type=jnp.float32)
        y = jnp.maximum(y, 0.0)                                         # (tm_eff, 128)
        # sublane-bucketed GAP partial sums: pure VPU vreg adds, no per-tile XLU reduce.
        acc_ref[...] += jnp.sum(y.reshape(tm_eff // 8, 8, 128), axis=0)

        @pl.when(si == pl.num_programs(2) - 1)
        def _finalize():
            o_ref[...] = acc_ref[...].reshape(1, 1, 8, 128)

    cost = pl.CostEstimate(
        flops=2 * n * rows_pad * 128 * 128,
        transcendentals=0,
        bytes_accessed=(patches.size * 2 + w_blk.size * 2
                        + n * n_splits * 8 * 128 * 4),
    )

    part = pl.pallas_call(
        kernel,
        out_shape=jax.ShapeDtypeStruct((n, n_splits, 8, 128), jnp.float32),
        grid_spec=pltpu.PrefetchScalarGridSpec(
            num_scalar_prefetch=0,
            grid=(n, n_splits, tiles_per_split),
            in_specs=[
                pl.BlockSpec((1, tm_eff, 128),
                             lambda b, hf, si: (b, hf * tiles_per_split + si, 0)),
                pl.BlockSpec((128, 128), lambda b, hf, si: (0, 0)),
            ],
            out_specs=pl.BlockSpec((1, 1, 8, 128), lambda b, hf, si: (b, hf, 0, 0)),
            scratch_shapes=[pltpu.VMEM((8, 128), jnp.float32)],
        ),
        compiler_params=pltpu.CompilerParams(
            dimension_semantics=("parallel", "parallel", "arbitrary"),
            vmem_limit_bytes=32 * 1024 * 1024,
        ),
        cost_estimate=cost,
    )(patches, w_blk)

    # Tiny XLA epilogue: fold spatial halves / sublane buckets / 4 pixel groups,
    # divide by the TRUE pixel count, and apply the (N,32)x(32,4) FC head.
    pooled = part.sum(axis=(1, 2)).reshape(n, px_per_row, kg).sum(axis=1) * (1.0 / s)
    return pooled[:, :cout] @ params["fc_w"].T + params["fc_b"]


# --------------------------- reference (pure JAX) ----------------------------


def reference_forward(x_nchw, params, *, quantize_bf16):
    n, cin, h, w = x_nchw.shape
    cout = params["conv_w"].shape[0]
    x_nhwc = jnp.transpose(x_nchw, (0, 2, 3, 1))
    patches = im2col_3x3(x_nhwc).reshape(n * h * w, 9 * cin)
    eps = 1e-5
    scale = params["bn_gamma"] / jnp.sqrt(params["bn_var"] + eps)
    shift = params["bn_beta"] - params["bn_mean"] * scale
    w_mat = jnp.transpose(params["conv_w"], (2, 3, 1, 0)).reshape(9 * cin, cout)
    w_folded = w_mat * scale[None, :]
    if quantize_bf16:
        patches = patches.astype(jnp.bfloat16).astype(jnp.float32)
        w_folded = w_folded.astype(jnp.bfloat16).astype(jnp.float32)
        shift = shift.astype(jnp.bfloat16).astype(jnp.float32)
    feat = jnp.maximum(
        jnp.dot(patches, w_folded, precision=jax.lax.Precision.HIGHEST) + shift, 0.0)
    pooled = feat.reshape(n, h * w, cout).mean(axis=1)
    return jnp.dot(pooled, params["fc_w"].T,
                   precision=jax.lax.Precision.HIGHEST) + params["fc_b"]


# ---------------------------------- main -------------------------------------


if __name__ == "__main__":
    key = jax.random.PRNGKey(0)
    k_x, k_cw, k_g, k_b, k_m, k_v, k_fw, k_fb = jax.random.split(key, 8)

    N, CIN, CMID, NUM_CLASSES = 2, 3, 32, 4

    params = {
        "conv_w": 0.1 * jax.random.normal(k_cw, (CMID, CIN, 3, 3), jnp.float32),
        "bn_gamma": 1.0 + 0.01 * jax.random.normal(k_g, (CMID,), jnp.float32),
        "bn_beta": 0.01 * jax.random.normal(k_b, (CMID,), jnp.float32),
        "bn_mean": 0.05 * jax.random.normal(k_m, (CMID,), jnp.float32),
        "bn_var": jnp.abs(1.0 + 0.1 * jax.random.normal(k_v, (CMID,), jnp.float32)),
        "fc_w": 0.1 * jax.random.normal(k_fw, (NUM_CLASSES, CMID), jnp.float32),
        "fc_b": 0.01 * jax.random.normal(k_fb, (NUM_CLASSES,), jnp.float32),
    }

    def check(x, tm_pixels):
        out = jax.block_until_ready(
            covid_general_forward(x, params, tm_pixels=tm_pixels))
        assert out.shape == (x.shape[0], NUM_CLASSES), out.shape
        ref_q = reference_forward(x, params, quantize_bf16=True)   # matches kernel's bf16 path
        ref_f = reference_forward(x, params, quantize_bf16=False)  # full-precision semantics
        assert jnp.allclose(out, ref_q, atol=5e-3, rtol=5e-3), (out, ref_q)
        assert jnp.allclose(out, ref_f, atol=3e-2, rtol=3e-2), (out, ref_f)

    # Case 1: 16x16 image (256 px = 64 packed rows), one reduction tile per spatial half.
    x1 = jax.random.normal(k_x, (N, CIN, 16, 16), dtype=jnp.float32)
    check(x1, tm_pixels=8192)

    # Case 2: 20x20 image (400 px = 100 packed rows), tiny tile -> multi-tile GAP
    # accumulation per half + zero-padded ragged tail (handled by the bias-lane fold).
    x2 = jax.random.normal(k_x, (N, CIN, 20, 20), dtype=jnp.float32)
    check(x2, tm_pixels=64)

    print("KERNEL_OK")
</pallas_src>

<mosaic_0001>
module attributes {stable_mosaic.version = 11 : i64} {
  func.func @kernel(%arg0: i32, %arg1: i32, %arg2: i32, %arg3: memref<1x32x128xbf16, #tpu.memory_space<vmem>>, %arg4: memref<128x128xbf16, #tpu.memory_space<vmem>>, %arg5: memref<1x1x8x128xf32, #tpu.memory_space<vmem>>, %arg6: memref<8x128xf32, #tpu.memory_space<vmem>>) attributes {dimension_semantics = [#tpu.dimension_semantics<parallel>, #tpu.dimension_semantics<parallel>, #tpu.dimension_semantics<arbitrary>], iteration_bounds = array<i64: 2, 2, 1>, scalar_prefetch = 0 : i64, scratch_operands = 1 : i64, tpu.core_type = #tpu.core_type<tc>, window_params = [{transform_indices = @transform_0, window_bounds = array<i64: 1, 32, 128>}, {pipeline_mode = #tpu.pipeline_mode<synchronous>, transform_indices = @transform_1, window_bounds = array<i64: 128, 128>}, {transform_indices = @transform_2, window_bounds = array<i64: 1, 1, 8, 128>}]} {
    %c0_i32 = arith.constant 0 : i32
    %0 = arith.cmpi eq, %arg2, %c0_i32 : i32
    %1 = arith.extui %0 : i1 to i32
    %c0_i32_0 = arith.constant 0 : i32
    %2 = arith.cmpi ne, %1, %c0_i32_0 : i32
    scf.if %2 {
      %cst_13 = arith.constant 0.000000e+00 : f32
      %17 = vector.broadcast %cst_13 : f32 to vector<8x128xf32>
      %c0_14 = arith.constant 0 : index
      %c0_15 = arith.constant 0 : index
      %18 = vector.load %arg6[%c0_14, %c0_15] : memref<8x128xf32, #tpu.memory_space<vmem>>, vector<8x128xf32>
      tpu.vector_store %arg6[%c0_14, %c0_15], %17 {strides = array<i32>} : memref<8x128xf32, #tpu.memory_space<vmem>>, vector<8x128xf32>,
    } else {
    }
    %c0 = arith.constant 0 : index
    %c0_1 = arith.constant 0 : index
    %c0_2 = arith.constant 0 : index
    %3 = vector.load %arg3[%c0, %c0_1, %c0_2] : memref<1x32x128xbf16, #tpu.memory_space<vmem>>, vector<1x32x128xbf16>
    %4 = vector.shape_cast %3 : vector<1x32x128xbf16> to vector<32x128xbf16>
    %c0_3 = arith.constant 0 : index
    %c0_4 = arith.constant 0 : index
    %5 = vector.load %arg4[%c0_3, %c0_4] : memref<128x128xbf16, #tpu.memory_space<vmem>>, vector<128x128xbf16>
    %cst = arith.constant dense<0.000000e+00> : vector<32x128xf32>
    %6 = tpu.matmul %4, %5, %cst {dimension_numbers = #tpu.dot_dimension_numbers<[1], [0], [0], [1], [0, 0, 1, 1], [], []>} : vector<32x128xbf16>, vector<128x128xbf16>, vector<32x128xf32> -> vector<32x128xf32>
    %cst_5 = arith.constant 0.000000e+00 : f32
    %7 = vector.broadcast %cst_5 : f32 to vector<32x128xf32>
    %8 = arith.maximumf %6, %7 : vector<32x128xf32>
    %c0_6 = arith.constant 0 : index
    %c0_7 = arith.constant 0 : index
    %9 = vector.load %arg6[%c0_6, %c0_7] : memref<8x128xf32, #tpu.memory_space<vmem>>, vector<8x128xf32>
    %10 = vector.shape_cast %8 : vector<32x128xf32> to vector<4x8x128xf32>
    %cst_8 = arith.constant dense<0.000000e+00> : vector<8x128xf32>
    %11 = vector.multi_reduction <add>, %10, %cst_8 [0] : vector<4x8x128xf32> to vector<8x128xf32>
    %12 = arith.addf %9, %11 : vector<8x128xf32>
    %c0_9 = arith.constant 0 : index
    %c0_10 = arith.constant 0 : index
    %13 = vector.load %arg6[%c0_9, %c0_10] : memref<8x128xf32, #tpu.memory_space<vmem>>, vector<8x128xf32>
    tpu.vector_store %arg6[%c0_9, %c0_10], %12 {strides = array<i32>} : memref<8x128xf32, #tpu.memory_space<vmem>>, vector<8x128xf32>,
    %c0_i32_11 = arith.constant 0 : i32
    %14 = arith.cmpi eq, %arg2, %c0_i32_11 : i32
    %15 = arith.extui %14 : i1 to i32
    %c0_i32_12 = arith.constant 0 : i32
    %16 = arith.cmpi ne, %15, %c0_i32_12 : i32
    scf.if %16 {
      %c0_13 = arith.constant 0 : index
      %c0_14 = arith.constant 0 : index
      %17 = vector.load %arg6[%c0_13, %c0_14] : memref<8x128xf32, #tpu.memory_space<vmem>>, vector<8x128xf32>
      %18 = vector.shape_cast %17 : vector<8x128xf32> to vector<1x1x8x128xf32>
      %c0_15 = arith.constant 0 : index
      %c0_16 = arith.constant 0 : index
      %c0_17 = arith.constant 0 : index
      %c0_18 = arith.constant 0 : index
      %19 = vector.load %arg5[%c0_15, %c0_16, %c0_17, %c0_18] : memref<1x1x8x128xf32, #tpu.memory_space<vmem>>, vector<1x1x8x128xf32>
      tpu.vector_store %arg5[%c0_15, %c0_16, %c0_17, %c0_18], %18 {strides = array<i32>} : memref<1x1x8x128xf32, #tpu.memory_space<vmem>>, vector<1x1x8x128xf32>,
    } else {
    }
    return
  }
  func.func @transform_0(%arg0: i32, %arg1: i32, %arg2: i32) -> (i32, i32, i32) {
    %c1_i32 = arith.constant 1 : i32
    %0 = arith.muli %arg1, %c1_i32 : i32
    %1 = arith.addi %0, %arg2 : i32
    %c0_i32 = arith.constant 0 : i32
    %c0_i32_0 = arith.constant 0 : i32
    return %arg0, %1, %c0_i32 : i32, i32, i32
  }
  func.func @transform_1(%arg0: i32, %arg1: i32, %arg2: i32) -> (i32, i32) {
    %c0_i32 = arith.constant 0 : i32
    %c0_i32_0 = arith.constant 0 : i32
    %c0_i32_1 = arith.constant 0 : i32
    return %c0_i32, %c0_i32_0 : i32, i32
  }
  func.func @transform_2(%arg0: i32, %arg1: i32, %arg2: i32) -> (i32, i32, i32, i32) {
    %c0_i32 = arith.constant 0 : i32
    %c0_i32_0 = arith.constant 0 : i32
    %c0_i32_1 = arith.constant 0 : i32
    return %arg0, %arg1, %c0_i32, %c0_i32_0 : i32, i32, i32, i32
  }
}

</mosaic_0001>

<bundles_post_ra>
// kernel: covid_general_forward.1
= control target key start
LH: loop header
LB: loop body
LE: loop exit
PB: predicated region body
PF: predicated region fallthrough
CT: control target
= control target key end

     0   :  { %s590_s9 = smov 0   ;;  %s592_s10 = smov 0   ;;  %s674_s0 = inlined_call_operand.vmem [shape: bf16[2,64,128], index: 0, kind: input, shape index: {}]   ;;  %s675_s1 = inlined_call_operand.vmem [shape: bf16[128,128], index: 1, kind: input, shape index: {}]   ;;  %s676_s2 = inlined_call_operand.vmem [shape: f32[2,2,8,128], index: 2, kind: output, shape index: {}]  }
   0x1   :  { %s594_s11 = smov 0   ;;  %s596_s12 = smov 0  }
   0x2   :  { %s598_s13 = smov 0  }
   0x3 LB: > { %s27_s14 = sadd.s32 1, %s565_s11  ;;  %s31_s15 = sadd.s32 1, %s569_s12  ;;  %s573_s13 = sphi %s598_s13, %s12_s13   ;;  %s569_s12 = sphi %s596_s12, %s680_s12   ;;  %s565_s11 = sphi %s594_s11, %s679_s11   ;;  %s561_s10 = sphi %s592_s10, %s678_s10   ;;  %s557_s9 = sphi %s590_s9, %s677_s9  }
   0x4   : > { %p29_p0 = scmp.ge.s32.totalorder %s27_s14, 2  ;;  %p437_p1 = scmp.ge.s32.totalorder %s573_s13, 1 }
   0x5   : > { %p144_p2 = scmp.lt.s32.totalorder %s573_s13, 5 }
   0x6   : > { %s682_s14 = smov (%p29_p0, %s27_s14), 0  ;;  %s684_s15 = smov (!%p29_p0, %s31_s15), %s569_s12 }
   0x7   : > { %p145_p3 = pnand %p437_p1, %p144_p2  ;;  %p33_p4 = scmp.ge.s32.totalorder %s684_s15, 2 }
   0x8   : > { %v525_v0 = vld [vmem:[%s675_s1] sm:$0xff] (!%p145_p3)   ;;  %s438_s18 = sshll.u32 (!%p145_p3), %s557_s9, 2  ;;  %v526_v1 = vld [vmem:[%s675_s1 + $0x8] sm:$0xff] (!%p145_p3)   ;;  %p176_p5 = scmp.lt.s32.totalorder (!%p145_p3), %s561_s10, 1  ;;  %v527_v2 = vld [vmem:[%s675_s1 + $0x10] sm:$0xff] (!%p145_p3)  }
   0x9   : > { %s686_s15 = smov (%p33_p4, %s684_s15), 0  ;;  %148 = sbr.rel (%p145_p3) target bundleno = 266 (0x10a), region = 28 }
   0xa   : > { %465 = vmatprep.subr.bf16.mxu0 (!%p145_p3), %v525_v0  ;;  %p178_p6 = scmp.lt.s32.totalorder (!%p145_p3), %s438_s18, 7  ;;  %v528_v3 = vld [vmem:[%s675_s1 + $0x18] sm:$0xff] (!%p145_p3)   ;;  %v529_v5 = vld [vmem:[%s675_s1 + $0x20] sm:$0xff] (!%p145_p3)   ;;  %v530_v6 = vld [vmem:[%s675_s1 + $0x28] sm:$0xff] (!%p145_p3)   ;;  %p188_p7 = scmp.lt.s32.totalorder (!%p145_p3), %s557_s9, 1 }
   0xb   : > { %466 = vmatpush3.bf16.msra.mxu0 (!%p145_p3), %v525_v0  ;;  %v531_v7 = vld [vmem:[%s675_s1 + $0x30] sm:$0xff] (!%p145_p3)   ;;  %v532_v8 = vld [vmem:[%s675_s1 + $0x38] sm:$0xff] (!%p145_p3)  }
   0xc   : > { %467 = vmatprep.subr.bf16.mxu0 (!%p145_p3), %v526_v1 }
   0xf   : > { %468 = vmatpush3.bf16.msra.mxu0 (!%p145_p3), %v526_v1 }
  0x10   : > { %s688_s10 = smov (!%p176_p5, %s561_s10), 1  ;;  %s690_s18 = smov (!%p178_p6, %s438_s18), 7  ;;  %469 = vmatprep.subr.bf16.mxu0 %v527_v2 }
  0x11   : > { %s439_s23 = sshll.u32 %s688_s10, 3  ;;  %s692_s9 = smov (!%p188_p7, %s557_s9), 1 }
  0x12   : > { %s181_s24 = sadd.s32 %s439_s23, %s690_s18  ;;  %s441_s18 = sshll.u32 %s688_s10, 1 }
  0x13   : > { %s440_s25 = sshll.u32 %s181_s24, 2  ;;  %470 = vmatpush3.bf16.msra.mxu0 %v527_v2  ;;  %s191_s19 = sadd.s32 %s441_s18, %s692_s9 }
  0x14   : > { %s183_s30 = scalar_lea.vmem %s674_s0, %s440_s25  ;;  %471 = vmatprep.subr.bf16.mxu0 %v528_v3  ;;  %s442_s20 = sshll.u32 %s191_s19, 3 }
  0x15   : > { %v533_v4 = vld [vmem:[%s183_s30] sm:$0xff]   ;;  %v534_v9 = vld [vmem:[%s183_s30 + $0x8] sm:$0xff]   ;;  %s193_s23 = scalar_lea.vmem %s676_s2, %s442_s20 }
  0x16   : > { %481 = vmatprep.mubr.bf16.mxu0 %v533_v4 }
  0x17   : > { %472 = vmatpush3.bf16.msra.mxu0 %v528_v3 }
  0x18   : > { %473 = vmatprep.subr.bf16.mxu0 %v529_v5 }
  0x1b   : > { %474 = vmatpush3.bf16.msra.mxu0 %v529_v5 }
  0x1c   : > { %475 = vmatprep.subr.bf16.mxu0 %v530_v6 }
  0x1f   : > { %476 = vmatpush3.bf16.msra.mxu0 %v530_v6 }
  0x20   : > { %477 = vmatprep.subr.bf16.mxu0 %v531_v7 }
  0x23   : > { %478 = vmatpush3.bf16.msra.mxu0 %v531_v7 }
  0x24   : > { %479 = vmatprep.subr.bf16.mxu0 %v532_v8 }
  0x27   : > { %480 = vmatpush3.bf16.msra.mxu0 %v532_v8 }
  0x2a   : > { %482 = vmatmul.mubr.bf16.vlgmr.msra.gmra.mrb[0].mxu0 %v534_v9 }
  0xfd   : > { %v483_v10 = vpop.f32.mrb[0].mxu0 }
  0xfe   : > { %v314_v11 = vpop.f32.mrb[1].mxu0  ;;  %v331_v16 = vmax.f32 %v483_v10, 0.0 }
  0xff   : > { %v484_v12 = vpop.f32.mrb[2].mxu0  ;;  %v329_v14 = vmax.f32 %v314_v11, 0.0 }
 0x100   : > { %v317_v13 = vpop.f32.mrb[3].mxu0  ;;  %v332_v18 = vmax.f32 %v484_v12, 0.0 }
 0x101   : > { %v330_v15 = vmax.f32 %v317_v13, 0.0 }
 0x103   : > { %v334_v17 = vadd.f32 %v330_v15, %v329_v14 }
 0x105   : > { %v335_v19 = vadd.f32 %v334_v17, %v331_v16 }
 0x107   : > { %v336_v20 = vadd.f32 %v335_v19, %v332_v18 }
 0x109   : > { %343 = vst [vmem:[%s193_s23] sm:$0xff] %v336_v20 }
 0x10a PF: > { %s12_s13 = sadd.s32 1, %s573_s13   ;;  %s677_s9 = smov %s565_s11 }
 0x10b   : > { %p9_p8 = scmp.ge.s32.totalorder %s12_s13, 6   ;;  %s678_s10 = smov %s569_s12 }
 0x10c   : > { %s679_s11 = smov %s682_s14  ;;  %s680_s12 = smov %s686_s15 }
 0x10d   :  { %11 = sbr.rel (!%p9_p8) target bundleno = 3 (0x3), region = 66 }

</bundles_post_ra>
